<compile_context>
chip_gen: v7x
topology: tpu7x:2x2x1
jax: 0.10.0
libtpu: 0.0.40
codegen_flags: <defaults>
</compile_context>

<pallas_src>
import jax
import jax.numpy as jnp
from jax.experimental import pallas as pl
from jax.experimental.pallas import tpu as pltpu

# ---------------------------- problem sizes ----------------------------
BATCH = 8
OBS_DIM = 24
NUM_AGENTS = 3
N_ACTIONS = 5                                  # per-agent discrete actions
IN_DIM = OBS_DIM + NUM_AGENTS * N_ACTIONS      # 39
HIDDEN = 64
ACT_DIM = N_ACTIONS                            # ACTLayer action space = Discrete(N_ACTIONS)
RECURRENT_N = 1
LN_EPS = 1e-5
SLAB = 128                                     # lane-dense per-step slab width

# --------------------- activation / output slab lanes -------------------
L_OBS = 0                                      # lanes [0, 24)   : cent_obs
L_ACT = OBS_DIM                                # lanes [24, 27)  : actions (as f32)
L_MASK = OBS_DIM + NUM_AGENTS                  # lane  27        : mask
L_HIN = 64                                     # lanes [64, 128) : rnn hidden state
O_H, O_ACT, O_LP = 0, HIDDEN, HIDDEN + 1       # output slab: h_new | action | logp

# ----------------------- packed-parameter layout ------------------------
# Single f32 block (PK_ROWS, 256); weight row offsets 8-aligned, wa lane offset
# 128-aligned.  Rows 0..11 hold all 1-D params (one per row, zero padded).
(P_FNG, P_FNB, P_B1, P_G1, P_BE1, P_B2, P_G2, P_BE2,
 P_GR, P_BR, P_BA, P_BG) = range(12)
PK_W1 = 16                                     # w1: rows [16, 55),   cols [0, 64)
PK_W2 = 56                                     # w2: rows [56, 120),  cols [0, 64)
PK_WA = 56                                     # wa: rows [56, 120),  cols [128, 133)
PK_WA_C0 = 128
PK_WG = 120                                    # gru: rows [120, 248), cols [0, 256)
PK_ROWS = PK_WG + 2 * HIDDEN                   # 248
PK_COLS = 4 * HIDDEN                           # 256


def _layernorm(x, gamma, beta):
    mu = jnp.mean(x, axis=-1, keepdims=True)
    xc = x - mu
    var = jnp.mean(xc * xc, axis=-1, keepdims=True)
    return xc * jax.lax.rsqrt(var + LN_EPS) * gamma + beta


def maa_kernel(act_ref, pk_ref, out_ref):
    f32 = jnp.float32
    H = HIDDEN
    B = act_ref.shape[0]

    slab = act_ref[...]                                       # (B, 128)
    acts_i = slab[:, L_ACT:L_ACT + NUM_AGENTS].astype(jnp.int32)
    mask = slab[:, L_MASK:L_MASK + 1]                         # (B, 1)
    h_prev = slab[:, L_HIN:L_HIN + H] * mask                  # (B, H)

    # ---- _get_maa_input (StarCraft2): one-hot actions at fixed lane offsets ----
    j = jax.lax.broadcasted_iota(jnp.int32, (B, IN_DIM), 1)
    oh = jnp.zeros((B, IN_DIM), f32)
    for a in range(NUM_AGENTS):                               # static, tiny
        oh = oh + (j == (acts_i[:, a:a + 1] + (OBS_DIM + a * N_ACTIONS))).astype(f32)
    x = jnp.where(j < OBS_DIM, slab[:, :IN_DIM], oh)          # (B, IN_DIM)

    # ---- MLPBase: feature LayerNorm + 2x (Linear -> ReLU -> LayerNorm) ----
    x = _layernorm(x, pk_ref[P_FNG:P_FNG + 1, :IN_DIM],
                   pk_ref[P_FNB:P_FNB + 1, :IN_DIM])
    h1 = jnp.dot(x, pk_ref[PK_W1:PK_W1 + IN_DIM, :H],
                 preferred_element_type=f32) + pk_ref[P_B1:P_B1 + 1, :H]
    h1 = _layernorm(jnp.maximum(h1, 0.0),
                    pk_ref[P_G1:P_G1 + 1, :H], pk_ref[P_BE1:P_BE1 + 1, :H])
    h2 = jnp.dot(h1, pk_ref[PK_W2:PK_W2 + H, :H],
                 preferred_element_type=f32) + pk_ref[P_B2:P_B2 + 1, :H]
    h2 = _layernorm(jnp.maximum(h2, 0.0),
                    pk_ref[P_G2:P_G2 + 1, :H], pk_ref[P_BE2:P_BE2 + 1, :H])

    # ---- RNNLayer: one fused GRU matmul (B,128)x(128,256), then LayerNorm ----
    xg = jnp.concatenate([h2, h_prev], axis=-1)               # (B, 2H)
    g = jnp.dot(xg, pk_ref[PK_WG:PK_WG + 2 * H, :],           # (B, 4H)
                preferred_element_type=f32) + pk_ref[P_BG:P_BG + 1, :]
    r = jax.nn.sigmoid(g[:, 0 * H:1 * H])                     # input+hidden pre-summed
    z = jax.nn.sigmoid(g[:, 1 * H:2 * H])
    n = jnp.tanh(g[:, 2 * H:3 * H] + r * g[:, 3 * H:4 * H])
    h_new = (1.0 - z) * n + z * h_prev
    feat = _layernorm(h_new, pk_ref[P_GR:P_GR + 1, :H], pk_ref[P_BR:P_BR + 1, :H])

    # ---- ACTLayer (Discrete, deterministic): argmax + log-prob of mode ----
    logits = jnp.dot(feat, pk_ref[PK_WA:PK_WA + H, PK_WA_C0:PK_WA_C0 + ACT_DIM],
                     preferred_element_type=f32) + pk_ref[P_BA:P_BA + 1, :ACT_DIM]
    maxv = jnp.max(logits, axis=-1, keepdims=True)
    ai = jax.lax.broadcasted_iota(jnp.int32, logits.shape, 1)
    cand = jnp.where(logits == maxv, ai, jnp.int32(ACT_DIM))  # first max (torch argmax)
    action = jnp.min(cand, axis=-1, keepdims=True)            # (B,1) int32
    lse = maxv + jnp.log(jnp.sum(jnp.exp(logits - maxv), axis=-1, keepdims=True))
    lp_sel = jnp.sum(jnp.where(ai == action, logits - lse, 0.0),
                     axis=-1, keepdims=True)

    # ---- single lane-dense (B,128) output slab: [h_new | action | logp | 0] ----
    out_ref[...] = jnp.concatenate(
        [h_new, action.astype(f32), lp_sel,
         jnp.zeros((B, SLAB - HIDDEN - 2), f32)], axis=-1)


def _vmem_spec():
    return pl.BlockSpec(memory_space=pltpu.MemorySpace.VMEM)


def pack_params(p):
    """One-time host-side packing of ALL parameters into one dense f32 block."""
    f32 = jnp.float32
    H = HIDDEN
    PK = jnp.zeros((PK_ROWS, PK_COLS), f32)
    # 1-D params
    PK = PK.at[P_FNG, :IN_DIM].set(p["fn_g"].reshape(-1))
    PK = PK.at[P_FNB, :IN_DIM].set(p["fn_b"].reshape(-1))
    PK = PK.at[P_B1, :H].set(p["b1"].reshape(-1))
    PK = PK.at[P_G1, :H].set(p["g1"].reshape(-1))
    PK = PK.at[P_BE1, :H].set(p["be1"].reshape(-1))
    PK = PK.at[P_B2, :H].set(p["b2"].reshape(-1))
    PK = PK.at[P_G2, :H].set(p["g2"].reshape(-1))
    PK = PK.at[P_BE2, :H].set(p["be2"].reshape(-1))
    PK = PK.at[P_GR, :H].set(p["gr"].reshape(-1))
    PK = PK.at[P_BR, :H].set(p["br"].reshape(-1))
    PK = PK.at[P_BA, :ACT_DIM].set(p["ba"].reshape(-1))
    b_ih = p["b_ih"].reshape(-1)
    b_hh = p["b_hh"].reshape(-1)
    PK = PK.at[P_BG, :2 * H].set(b_ih[:2 * H] + b_hh[:2 * H])   # r,z biases pre-summed
    PK = PK.at[P_BG, 2 * H:3 * H].set(b_ih[2 * H:])              # n-gate input bias
    PK = PK.at[P_BG, 3 * H:].set(b_hh[2 * H:])                   # n-gate hidden bias
    # weights
    PK = PK.at[PK_W1:PK_W1 + IN_DIM, :H].set(p["w1"])
    PK = PK.at[PK_W2:PK_W2 + H, :H].set(p["w2"])
    PK = PK.at[PK_WA:PK_WA + H, PK_WA_C0:PK_WA_C0 + ACT_DIM].set(p["wa"])
    # dense-repacked GRU: cols [0,2H)=r,z input+hidden stacked; [2H,3H)=n input;
    # [3H,4H)=n hidden  ->  [h2 | h_prev] @ PK_WG = [g_rz | g_in | g_hn]
    wi, wh = p["w_ih_t"], p["w_hh_t"]                            # (H, 3H), gate order r,z,n
    PK = PK.at[PK_WG:PK_WG + H, :2 * H].set(wi[:, :2 * H])
    PK = PK.at[PK_WG + H:PK_WG + 2 * H, :2 * H].set(wh[:, :2 * H])
    PK = PK.at[PK_WG:PK_WG + H, 2 * H:3 * H].set(wi[:, 2 * H:])
    PK = PK.at[PK_WG + H:PK_WG + 2 * H, 3 * H:].set(wh[:, 2 * H:])
    return {"pk": PK}


@jax.jit
def maa_forward(cent_obs, actions_all, rnn_states_maa, masks, packed):
    """MAA.forward with deterministic=True, available_actions_all=None."""
    b = cent_obs.shape[0]
    h_in = rnn_states_maa.reshape(b, HIDDEN)      # recurrent_N == 1 (free reshape)
    pad = jnp.zeros((b, L_HIN - L_MASK - 1), jnp.float32)
    act_slab = jnp.concatenate(                   # one lane-dense (B,128) input slab
        [cent_obs, actions_all.astype(jnp.float32), masks, pad, h_in], axis=-1)

    out = pl.pallas_call(
        maa_kernel,
        out_shape=jax.ShapeDtypeStruct((b, SLAB), jnp.float32),
        in_specs=[_vmem_spec(), _vmem_spec()],
        out_specs=_vmem_spec(),
        input_output_aliases={0: 0},              # recycle the slab buffer in HBM
        cost_estimate=pl.CostEstimate(
            flops=2 * b * (IN_DIM * HIDDEN + HIDDEN * HIDDEN
                           + 2 * HIDDEN * 4 * HIDDEN + HIDDEN * ACT_DIM),
            transcendentals=2 * b * (3 * HIDDEN + ACT_DIM + 8),
            bytes_accessed=PK_ROWS * PK_COLS * 4 + 2 * b * SLAB * 4),
    )(act_slab, packed["pk"])

    actions = out[:, O_ACT:O_ACT + 1].astype(jnp.int32)
    log_probs = out[:, O_LP:O_LP + 1]
    rnn_states_out = out[:, O_H:O_H + HIDDEN].reshape(b, RECURRENT_N, HIDDEN)
    return actions, log_probs, rnn_states_out


# ----------------------------- pure-JAX reference -----------------------------
def maa_forward_ref(cent_obs, actions_all, rnn_states_maa, masks, p):
    b = cent_obs.shape[0]
    onehot = jax.nn.one_hot(actions_all.astype(jnp.int32), N_ACTIONS, dtype=jnp.float32)
    x = jnp.concatenate([cent_obs.reshape(b, -1), onehot.reshape(b, -1)], axis=-1)
    ln = lambda v, g, bt: (v - v.mean(-1, keepdims=True)) / jnp.sqrt(
        v.var(-1, keepdims=True) + LN_EPS) * g + bt
    x = ln(x, p["fn_g"], p["fn_b"])
    h1 = ln(jax.nn.relu(x @ p["w1"] + p["b1"]), p["g1"], p["be1"])
    h2 = ln(jax.nn.relu(h1 @ p["w2"] + p["b2"]), p["g2"], p["be2"])
    hp = rnn_states_maa.reshape(b, HIDDEN) * masks
    gi = h2 @ p["w_ih_t"] + p["b_ih"]
    gh = hp @ p["w_hh_t"] + p["b_hh"]
    H = HIDDEN
    r = jax.nn.sigmoid(gi[:, :H] + gh[:, :H])
    z = jax.nn.sigmoid(gi[:, H:2 * H] + gh[:, H:2 * H])
    n = jnp.tanh(gi[:, 2 * H:] + r * gh[:, 2 * H:])
    hn = (1 - z) * n + z * hp
    feat = ln(hn, p["gr"], p["br"])
    logits = feat @ p["wa"] + p["ba"]
    act = jnp.argmax(logits, axis=-1, keepdims=True).astype(jnp.int32)
    lp = jax.nn.log_softmax(logits, axis=-1)
    lps = jnp.take_along_axis(lp, act, axis=-1)
    return act, lps, hn.reshape(b, RECURRENT_N, HIDDEN)


# --------------------------------- params --------------------------------------
def init_params(key):
    ks = jax.random.split(key, 8)
    s = 0.1
    return {
        "fn_g": jnp.ones((1, IN_DIM), jnp.float32),
        "fn_b": jnp.zeros((1, IN_DIM), jnp.float32),
        "w1": s * jax.random.normal(ks[0], (IN_DIM, HIDDEN), jnp.float32),
        "b1": jnp.zeros((1, HIDDEN), jnp.float32),
        "g1": jnp.ones((1, HIDDEN), jnp.float32),
        "be1": jnp.zeros((1, HIDDEN), jnp.float32),
        "w2": s * jax.random.normal(ks[1], (HIDDEN, HIDDEN), jnp.float32),
        "b2": jnp.zeros((1, HIDDEN), jnp.float32),
        "g2": jnp.ones((1, HIDDEN), jnp.float32),
        "be2": jnp.zeros((1, HIDDEN), jnp.float32),
        # GRU weights stored transposed: (input_dim, 3*hidden), gate order r,z,n
        "w_ih_t": s * jax.random.normal(ks[2], (HIDDEN, 3 * HIDDEN), jnp.float32),
        "w_hh_t": s * jax.random.normal(ks[3], (HIDDEN, 3 * HIDDEN), jnp.float32),
        "b_ih": s * jax.random.normal(ks[4], (1, 3 * HIDDEN), jnp.float32),
        "b_hh": s * jax.random.normal(ks[5], (1, 3 * HIDDEN), jnp.float32),
        "gr": jnp.ones((1, HIDDEN), jnp.float32),
        "br": jnp.zeros((1, HIDDEN), jnp.float32),
        "wa": s * jax.random.normal(ks[6], (HIDDEN, ACT_DIM), jnp.float32),
        "ba": s * jax.random.normal(ks[7], (1, ACT_DIM), jnp.float32),
    }


if __name__ == "__main__":
    key = jax.random.PRNGKey(0)
    k_obs, k_act, k_h, k_p = jax.random.split(key, 4)

    cent_obs = jax.random.normal(k_obs, (BATCH, OBS_DIM), jnp.float32)
    actions_all = jax.random.randint(
        k_act, (BATCH, NUM_AGENTS), 0, N_ACTIONS).astype(jnp.float32)
    rnn_states_maa = jax.random.normal(k_h, (BATCH, RECURRENT_N, HIDDEN), jnp.float32)
    masks = jnp.ones((BATCH, 1), jnp.float32)
    params = init_params(k_p)
    packed = pack_params(params)          # one-time packing (init-time, not per step)

    actions, log_probs, rnn_out = maa_forward(
        cent_obs, actions_all, rnn_states_maa, masks, packed)
    jax.block_until_ready((actions, log_probs, rnn_out))

    a_ref, lp_ref, h_ref = maa_forward_ref(
        cent_obs, actions_all, rnn_states_maa, masks, params)
    assert jnp.array_equal(actions, a_ref)
    assert jnp.allclose(log_probs, lp_ref, atol=1e-4, rtol=1e-4)
    assert jnp.allclose(rnn_out, h_ref, atol=1e-4, rtol=1e-4)

    print("KERNEL_OK")
</pallas_src>

<mosaic_0001>
module attributes {stable_mosaic.version = 11 : i64} {
  func.func @maa_kernel(%arg0: memref<8x128xf32, #tpu.memory_space<vmem>>, %arg1: memref<248x256xf32, #tpu.memory_space<vmem>>, %arg2: memref<8x128xf32, #tpu.memory_space<vmem>>) attributes {dimension_semantics = [], scalar_prefetch = 0 : i64, scratch_operands = 0 : i64, tpu.core_type = #tpu.core_type<tc>} {
    %c0 = arith.constant 0 : index
    %c0_0 = arith.constant 0 : index
    %0 = vector.load %arg0[%c0, %c0_0] : memref<8x128xf32, #tpu.memory_space<vmem>>, vector<8x128xf32>
    %1 = vector.extract_strided_slice %0 {offsets = [0, 24], sizes = [8, 3], strides = [1, 1]} : vector<8x128xf32> to vector<8x3xf32>
    %2 = arith.fptosi %1 : vector<8x3xf32> to vector<8x3xi32>
    %3 = vector.extract_strided_slice %0 {offsets = [0, 27], sizes = [8, 1], strides = [1, 1]} : vector<8x128xf32> to vector<8x1xf32>
    %4 = vector.extract_strided_slice %0 {offsets = [0, 64], sizes = [8, 64], strides = [1, 1]} : vector<8x128xf32> to vector<8x64xf32>
    %5 = vector.broadcast %3 : vector<8x1xf32> to vector<8x64xf32>
    %6 = arith.mulf %4, %5 : vector<8x64xf32>
    %7 = tpu.iota {dimensions = array<i32: 1>} : vector<8x39xi32>
    %cst = arith.constant 0.000000e+00 : f32
    %8 = vector.broadcast %cst : f32 to vector<8x39xf32>
    %9 = vector.extract_strided_slice %2 {offsets = [0, 0], sizes = [8, 1], strides = [1, 1]} : vector<8x3xi32> to vector<8x1xi32>
    %c24_i32 = arith.constant 24 : i32
    %10 = vector.broadcast %c24_i32 : i32 to vector<8x1xi32>
    %11 = arith.addi %9, %10 : vector<8x1xi32>
    %12 = vector.broadcast %11 : vector<8x1xi32> to vector<8x39xi32>
    %13 = arith.cmpi eq, %7, %12 : vector<8x39xi32>
    %14 = arith.extui %13 : vector<8x39xi1> to vector<8x39xi32>
    %15 = arith.sitofp %14 : vector<8x39xi32> to vector<8x39xf32>
    %16 = arith.addf %8, %15 : vector<8x39xf32>
    %17 = vector.extract_strided_slice %2 {offsets = [0, 1], sizes = [8, 1], strides = [1, 1]} : vector<8x3xi32> to vector<8x1xi32>
    %c29_i32 = arith.constant 29 : i32
    %18 = vector.broadcast %c29_i32 : i32 to vector<8x1xi32>
    %19 = arith.addi %17, %18 : vector<8x1xi32>
    %20 = vector.broadcast %19 : vector<8x1xi32> to vector<8x39xi32>
    %21 = arith.cmpi eq, %7, %20 : vector<8x39xi32>
    %22 = arith.extui %21 : vector<8x39xi1> to vector<8x39xi32>
    %23 = arith.sitofp %22 : vector<8x39xi32> to vector<8x39xf32>
    %24 = arith.addf %16, %23 : vector<8x39xf32>
    %25 = vector.extract_strided_slice %2 {offsets = [0, 2], sizes = [8, 1], strides = [1, 1]} : vector<8x3xi32> to vector<8x1xi32>
    %c34_i32 = arith.constant 34 : i32
    %26 = vector.broadcast %c34_i32 : i32 to vector<8x1xi32>
    %27 = arith.addi %25, %26 : vector<8x1xi32>
    %28 = vector.broadcast %27 : vector<8x1xi32> to vector<8x39xi32>
    %29 = arith.cmpi eq, %7, %28 : vector<8x39xi32>
    %30 = arith.extui %29 : vector<8x39xi1> to vector<8x39xi32>
    %31 = arith.sitofp %30 : vector<8x39xi32> to vector<8x39xf32>
    %32 = arith.addf %24, %31 : vector<8x39xf32>
    %c24_i32_1 = arith.constant 24 : i32
    %33 = vector.broadcast %c24_i32_1 : i32 to vector<8x39xi32>
    %34 = arith.cmpi slt, %7, %33 : vector<8x39xi32>
    %35 = vector.extract_strided_slice %0 {offsets = [0, 0], sizes = [8, 39], strides = [1, 1]} : vector<8x128xf32> to vector<8x39xf32>
    %36 = arith.select %34, %35, %32 : vector<8x39xi1>, vector<8x39xf32>
    %c0_2 = arith.constant 0 : index
    %c0_3 = arith.constant 0 : index
    %37 = vector.load %arg1[%c0_2, %c0_3] : memref<248x256xf32, #tpu.memory_space<vmem>>, vector<1x39xf32>
    %c1 = arith.constant 1 : index
    %c0_4 = arith.constant 0 : index
    %38 = vector.load %arg1[%c1, %c0_4] : memref<248x256xf32, #tpu.memory_space<vmem>>, vector<1x39xf32>
    %cst_5 = arith.constant dense<0.000000e+00> : vector<8xf32>
    %39 = vector.multi_reduction <add>, %36, %cst_5 [1] : vector<8x39xf32> to vector<8xf32>
    %40 = vector.shape_cast %39 : vector<8xf32> to vector<8x1xf32>
    %cst_6 = arith.constant 3.900000e+01 : f32
    %41 = vector.broadcast %cst_6 : f32 to vector<8x1xf32>
    %42 = arith.divf %40, %41 : vector<8x1xf32>
    %43 = vector.broadcast %42 : vector<8x1xf32> to vector<8x39xf32>
    %44 = arith.subf %36, %43 : vector<8x39xf32>
    %45 = arith.mulf %44, %44 : vector<8x39xf32>
    %cst_7 = arith.constant dense<0.000000e+00> : vector<8xf32>
    %46 = vector.multi_reduction <add>, %45, %cst_7 [1] : vector<8x39xf32> to vector<8xf32>
    %47 = vector.shape_cast %46 : vector<8xf32> to vector<8x1xf32>
    %cst_8 = arith.constant 3.900000e+01 : f32
    %48 = vector.broadcast %cst_8 : f32 to vector<8x1xf32>
    %49 = arith.divf %47, %48 : vector<8x1xf32>
    %cst_9 = arith.constant 9.99999974E-6 : f32
    %50 = vector.broadcast %cst_9 : f32 to vector<8x1xf32>
    %51 = arith.addf %49, %50 : vector<8x1xf32>
    %52 = math.rsqrt %51 : vector<8x1xf32>
    %53 = vector.broadcast %52 : vector<8x1xf32> to vector<8x39xf32>
    %54 = arith.mulf %44, %53 : vector<8x39xf32>
    %55 = vector.broadcast %37 : vector<1x39xf32> to vector<8x39xf32>
    %56 = arith.mulf %54, %55 : vector<8x39xf32>
    %57 = vector.broadcast %38 : vector<1x39xf32> to vector<8x39xf32>
    %58 = arith.addf %56, %57 : vector<8x39xf32>
    %c16 = arith.constant 16 : index
    %c0_10 = arith.constant 0 : index
    %59 = vector.load %arg1[%c16, %c0_10] : memref<248x256xf32, #tpu.memory_space<vmem>>, vector<39x64xf32>
    %cst_11 = arith.constant dense<0.000000e+00> : vector<8x64xf32>
    %60 = tpu.matmul %58, %59, %cst_11 {dimension_numbers = #tpu.dot_dimension_numbers<[1], [0], [0], [1], [0, 0, 1, 1], [], []>} : vector<8x39xf32>, vector<39x64xf32>, vector<8x64xf32> -> vector<8x64xf32>
    %c2 = arith.constant 2 : index
    %c0_12 = arith.constant 0 : index
    %61 = vector.load %arg1[%c2, %c0_12] : memref<248x256xf32, #tpu.memory_space<vmem>>, vector<1x64xf32>
    %62 = vector.broadcast %61 : vector<1x64xf32> to vector<8x64xf32>
    %63 = arith.addf %60, %62 : vector<8x64xf32>
    %cst_13 = arith.constant 0.000000e+00 : f32
    %64 = vector.broadcast %cst_13 : f32 to vector<8x64xf32>
    %65 = arith.maximumf %63, %64 : vector<8x64xf32>
    %c3 = arith.constant 3 : index
    %c0_14 = arith.constant 0 : index
    %66 = vector.load %arg1[%c3, %c0_14] : memref<248x256xf32, #tpu.memory_space<vmem>>, vector<1x64xf32>
    %c4 = arith.constant 4 : index
    %c0_15 = arith.constant 0 : index
    %67 = vector.load %arg1[%c4, %c0_15] : memref<248x256xf32, #tpu.memory_space<vmem>>, vector<1x64xf32>
    %cst_16 = arith.constant dense<0.000000e+00> : vector<8xf32>
    %68 = vector.multi_reduction <add>, %65, %cst_16 [1] : vector<8x64xf32> to vector<8xf32>
    %69 = vector.shape_cast %68 : vector<8xf32> to vector<8x1xf32>
    %cst_17 = arith.constant 6.400000e+01 : f32
    %70 = vector.broadcast %cst_17 : f32 to vector<8x1xf32>
    %71 = arith.divf %69, %70 : vector<8x1xf32>
    %72 = vector.broadcast %71 : vector<8x1xf32> to vector<8x64xf32>
    %73 = arith.subf %65, %72 : vector<8x64xf32>
    %74 = arith.mulf %73, %73 : vector<8x64xf32>
    %cst_18 = arith.constant dense<0.000000e+00> : vector<8xf32>
    %75 = vector.multi_reduction <add>, %74, %cst_18 [1] : vector<8x64xf32> to vector<8xf32>
    %76 = vector.shape_cast %75 : vector<8xf32> to vector<8x1xf32>
    %cst_19 = arith.constant 6.400000e+01 : f32
    %77 = vector.broadcast %cst_19 : f32 to vector<8x1xf32>
    %78 = arith.divf %76, %77 : vector<8x1xf32>
    %cst_20 = arith.constant 9.99999974E-6 : f32
    %79 = vector.broadcast %cst_20 : f32 to vector<8x1xf32>
    %80 = arith.addf %78, %79 : vector<8x1xf32>
    %81 = math.rsqrt %80 : vector<8x1xf32>
    %82 = vector.broadcast %81 : vector<8x1xf32> to vector<8x64xf32>
    %83 = arith.mulf %73, %82 : vector<8x64xf32>
    %84 = vector.broadcast %66 : vector<1x64xf32> to vector<8x64xf32>
    %85 = arith.mulf %83, %84 : vector<8x64xf32>
    %86 = vector.broadcast %67 : vector<1x64xf32> to vector<8x64xf32>
    %87 = arith.addf %85, %86 : vector<8x64xf32>
    %c56 = arith.constant 56 : index
    %c0_21 = arith.constant 0 : index
    %88 = vector.load %arg1[%c56, %c0_21] : memref<248x256xf32, #tpu.memory_space<vmem>>, vector<64x64xf32>
    %cst_22 = arith.constant dense<0.000000e+00> : vector<8x64xf32>
    %89 = tpu.matmul %87, %88, %cst_22 {dimension_numbers = #tpu.dot_dimension_numbers<[1], [0], [0], [1], [0, 0, 1, 1], [], []>} : vector<8x64xf32>, vector<64x64xf32>, vector<8x64xf32> -> vector<8x64xf32>
    %c5 = arith.constant 5 : index
    %c0_23 = arith.constant 0 : index
    %90 = vector.load %arg1[%c5, %c0_23] : memref<248x256xf32, #tpu.memory_space<vmem>>, vector<1x64xf32>
    %91 = vector.broadcast %90 : vector<1x64xf32> to vector<8x64xf32>
    %92 = arith.addf %89, %91 : vector<8x64xf32>
    %cst_24 = arith.constant 0.000000e+00 : f32
    %93 = vector.broadcast %cst_24 : f32 to vector<8x64xf32>
    %94 = arith.maximumf %92, %93 : vector<8x64xf32>
    %c6 = arith.constant 6 : index
    %c0_25 = arith.constant 0 : index
    %95 = vector.load %arg1[%c6, %c0_25] : memref<248x256xf32, #tpu.memory_space<vmem>>, vector<1x64xf32>
    %c7 = arith.constant 7 : index
    %c0_26 = arith.constant 0 : index
    %96 = vector.load %arg1[%c7, %c0_26] : memref<248x256xf32, #tpu.memory_space<vmem>>, vector<1x64xf32>
    %cst_27 = arith.constant dense<0.000000e+00> : vector<8xf32>
    %97 = vector.multi_reduction <add>, %94, %cst_27 [1] : vector<8x64xf32> to vector<8xf32>
    %98 = vector.shape_cast %97 : vector<8xf32> to vector<8x1xf32>
    %cst_28 = arith.constant 6.400000e+01 : f32
    %99 = vector.broadcast %cst_28 : f32 to vector<8x1xf32>
    %100 = arith.divf %98, %99 : vector<8x1xf32>
    %101 = vector.broadcast %100 : vector<8x1xf32> to vector<8x64xf32>
    %102 = arith.subf %94, %101 : vector<8x64xf32>
    %103 = arith.mulf %102, %102 : vector<8x64xf32>
    %cst_29 = arith.constant dense<0.000000e+00> : vector<8xf32>
    %104 = vector.multi_reduction <add>, %103, %cst_29 [1] : vector<8x64xf32> to vector<8xf32>
    %105 = vector.shape_cast %104 : vector<8xf32> to vector<8x1xf32>
    %cst_30 = arith.constant 6.400000e+01 : f32
    %106 = vector.broadcast %cst_30 : f32 to vector<8x1xf32>
    %107 = arith.divf %105, %106 : vector<8x1xf32>
    %cst_31 = arith.constant 9.99999974E-6 : f32
    %108 = vector.broadcast %cst_31 : f32 to vector<8x1xf32>
    %109 = arith.addf %107, %108 : vector<8x1xf32>
    %110 = math.rsqrt %109 : vector<8x1xf32>
    %111 = vector.broadcast %110 : vector<8x1xf32> to vector<8x64xf32>
    %112 = arith.mulf %102, %111 : vector<8x64xf32>
    %113 = vector.broadcast %95 : vector<1x64xf32> to vector<8x64xf32>
    %114 = arith.mulf %112, %113 : vector<8x64xf32>
    %115 = vector.broadcast %96 : vector<1x64xf32> to vector<8x64xf32>
    %116 = arith.addf %114, %115 : vector<8x64xf32>
    %117 = tpu.concatenate %116, %6 in 1 : vector<8x64xf32>, vector<8x64xf32> -> vector<8x128xf32>
    %c120 = arith.constant 120 : index
    %c0_32 = arith.constant 0 : index
    %118 = vector.load %arg1[%c120, %c0_32] : memref<248x256xf32, #tpu.memory_space<vmem>>, vector<128x256xf32>
    %cst_33 = arith.constant dense<0.000000e+00> : vector<8x256xf32>
    %119 = tpu.matmul %117, %118, %cst_33 {dimension_numbers = #tpu.dot_dimension_numbers<[1], [0], [0], [1], [0, 0, 1, 1], [], []>} : vector<8x128xf32>, vector<128x256xf32>, vector<8x256xf32> -> vector<8x256xf32>
    %c11 = arith.constant 11 : index
    %c0_34 = arith.constant 0 : index
    %120 = vector.load %arg1[%c11, %c0_34] : memref<248x256xf32, #tpu.memory_space<vmem>>, vector<1x256xf32>
    %121 = vector.broadcast %120 : vector<1x256xf32> to vector<8x256xf32>
    %122 = arith.addf %119, %121 : vector<8x256xf32>
    %123 = vector.extract_strided_slice %122 {offsets = [0, 0], sizes = [8, 64], strides = [1, 1]} : vector<8x256xf32> to vector<8x64xf32>
    %124 = arith.negf %123 : vector<8x64xf32>
    %125 = math.exp %124 : vector<8x64xf32>
    %cst_35 = arith.constant 1.000000e+00 : f32
    %126 = vector.broadcast %cst_35 : f32 to vector<8x64xf32>
    %127 = arith.addf %126, %125 : vector<8x64xf32>
    %128 = arith.divf %126, %127 : vector<8x64xf32>
    %129 = vector.extract_strided_slice %122 {offsets = [0, 64], sizes = [8, 64], strides = [1, 1]} : vector<8x256xf32> to vector<8x64xf32>
    %130 = arith.negf %129 : vector<8x64xf32>
    %131 = math.exp %130 : vector<8x64xf32>
    %cst_36 = arith.constant 1.000000e+00 : f32
    %132 = vector.broadcast %cst_36 : f32 to vector<8x64xf32>
    %133 = arith.addf %132, %131 : vector<8x64xf32>
    %134 = arith.divf %132, %133 : vector<8x64xf32>
    %135 = vector.extract_strided_slice %122 {offsets = [0, 128], sizes = [8, 64], strides = [1, 1]} : vector<8x256xf32> to vector<8x64xf32>
    %136 = vector.extract_strided_slice %122 {offsets = [0, 192], sizes = [8, 64], strides = [1, 1]} : vector<8x256xf32> to vector<8x64xf32>
    %137 = arith.mulf %128, %136 : vector<8x64xf32>
    %138 = arith.addf %135, %137 : vector<8x64xf32>
    %139 = math.tanh %138 : vector<8x64xf32>
    %cst_37 = arith.constant 1.000000e+00 : f32
    %140 = vector.broadcast %cst_37 : f32 to vector<8x64xf32>
    %141 = arith.subf %140, %134 : vector<8x64xf32>
    %142 = arith.mulf %141, %139 : vector<8x64xf32>
    %143 = arith.mulf %134, %6 : vector<8x64xf32>
    %144 = arith.addf %142, %143 : vector<8x64xf32>
    %c8 = arith.constant 8 : index
    %c0_38 = arith.constant 0 : index
    %145 = vector.load %arg1[%c8, %c0_38] : memref<248x256xf32, #tpu.memory_space<vmem>>, vector<1x64xf32>
    %c9 = arith.constant 9 : index
    %c0_39 = arith.constant 0 : index
    %146 = vector.load %arg1[%c9, %c0_39] : memref<248x256xf32, #tpu.memory_space<vmem>>, vector<1x64xf32>
    %cst_40 = arith.constant dense<0.000000e+00> : vector<8xf32>
    %147 = vector.multi_reduction <add>, %144, %cst_40 [1] : vector<8x64xf32> to vector<8xf32>
    %148 = vector.shape_cast %147 : vector<8xf32> to vector<8x1xf32>
    %cst_41 = arith.constant 6.400000e+01 : f32
    %149 = vector.broadcast %cst_41 : f32 to vector<8x1xf32>
    %150 = arith.divf %148, %149 : vector<8x1xf32>
    %151 = vector.broadcast %150 : vector<8x1xf32> to vector<8x64xf32>
    %152 = arith.subf %144, %151 : vector<8x64xf32>
    %153 = arith.mulf %152, %152 : vector<8x64xf32>
    %cst_42 = arith.constant dense<0.000000e+00> : vector<8xf32>
    %154 = vector.multi_reduction <add>, %153, %cst_42 [1] : vector<8x64xf32> to vector<8xf32>
    %155 = vector.shape_cast %154 : vector<8xf32> to vector<8x1xf32>
    %cst_43 = arith.constant 6.400000e+01 : f32
    %156 = vector.broadcast %cst_43 : f32 to vector<8x1xf32>
    %157 = arith.divf %155, %156 : vector<8x1xf32>
    %cst_44 = arith.constant 9.99999974E-6 : f32
    %158 = vector.broadcast %cst_44 : f32 to vector<8x1xf32>
    %159 = arith.addf %157, %158 : vector<8x1xf32>
    %160 = math.rsqrt %159 : vector<8x1xf32>
    %161 = vector.broadcast %160 : vector<8x1xf32> to vector<8x64xf32>
    %162 = arith.mulf %152, %161 : vector<8x64xf32>
    %163 = vector.broadcast %145 : vector<1x64xf32> to vector<8x64xf32>
    %164 = arith.mulf %162, %163 : vector<8x64xf32>
    %165 = vector.broadcast %146 : vector<1x64xf32> to vector<8x64xf32>
    %166 = arith.addf %164, %165 : vector<8x64xf32>
    %c56_45 = arith.constant 56 : index
    %c128 = arith.constant 128 : index
    %167 = vector.load %arg1[%c56_45, %c128] : memref<248x256xf32, #tpu.memory_space<vmem>>, vector<64x5xf32>
    %cst_46 = arith.constant dense<0.000000e+00> : vector<8x5xf32>
    %168 = tpu.matmul %166, %167, %cst_46 {dimension_numbers = #tpu.dot_dimension_numbers<[1], [0], [0], [1], [0, 0, 1, 1], [], []>} : vector<8x64xf32>, vector<64x5xf32>, vector<8x5xf32> -> vector<8x5xf32>
    %c10 = arith.constant 10 : index
    %c0_47 = arith.constant 0 : index
    %169 = vector.load %arg1[%c10, %c0_47] : memref<248x256xf32, #tpu.memory_space<vmem>>, vector<1x5xf32>
    %170 = vector.broadcast %169 : vector<1x5xf32> to vector<8x5xf32>
    %171 = arith.addf %168, %170 : vector<8x5xf32>
    %cst_48 = arith.constant dense<0xFF800000> : vector<8xf32>
    %172 = vector.multi_reduction <maximumf>, %171, %cst_48 [1] : vector<8x5xf32> to vector<8xf32>
    %173 = vector.shape_cast %172 : vector<8xf32> to vector<8x1xf32>
    %174 = tpu.iota {dimensions = array<i32: 1>} : vector<8x5xi32>
    %175 = vector.broadcast %173 : vector<8x1xf32> to vector<8x5xf32>
    %176 = arith.cmpf oeq, %171, %175 : vector<8x5xf32>
    %c5_i32 = arith.constant 5 : i32
    %177 = vector.broadcast %c5_i32 : i32 to vector<8x5xi32>
    %178 = arith.select %176, %174, %177 : vector<8x5xi1>, vector<8x5xi32>
    %cst_49 = arith.constant dense<2147483647> : vector<8xi32>
    %179 = vector.multi_reduction <minsi>, %178, %cst_49 [1] : vector<8x5xi32> to vector<8xi32>
    %180 = vector.shape_cast %179 : vector<8xi32> to vector<8x1xi32>
    %181 = vector.broadcast %173 : vector<8x1xf32> to vector<8x5xf32>
    %182 = arith.subf %171, %181 : vector<8x5xf32>
    %183 = math.exp %182 : vector<8x5xf32>
    %cst_50 = arith.constant dense<0.000000e+00> : vector<8xf32>
    %184 = vector.multi_reduction <add>, %183, %cst_50 [1] : vector<8x5xf32> to vector<8xf32>
    %185 = vector.shape_cast %184 : vector<8xf32> to vector<8x1xf32>
    %186 = math.log %185 : vector<8x1xf32>
    %187 = arith.addf %173, %186 : vector<8x1xf32>
    %188 = vector.broadcast %180 : vector<8x1xi32> to vector<8x5xi32>
    %189 = arith.cmpi eq, %174, %188 : vector<8x5xi32>
    %190 = vector.broadcast %187 : vector<8x1xf32> to vector<8x5xf32>
    %191 = arith.subf %171, %190 : vector<8x5xf32>
    %cst_51 = arith.constant 0.000000e+00 : f32
    %192 = vector.broadcast %cst_51 : f32 to vector<8x5xf32>
    %193 = arith.select %189, %191, %192 : vector<8x5xi1>, vector<8x5xf32>
    %cst_52 = arith.constant dense<0.000000e+00> : vector<8xf32>
    %194 = vector.multi_reduction <add>, %193, %cst_52 [1] : vector<8x5xf32> to vector<8xf32>
    %195 = vector.shape_cast %194 : vector<8xf32> to vector<8x1xf32>
    %196 = arith.sitofp %180 : vector<8x1xi32> to vector<8x1xf32>
    %cst_53 = arith.constant 0.000000e+00 : f32
    %197 = vector.broadcast %cst_53 : f32 to vector<8x62xf32>
    %198 = tpu.concatenate %144, %196, %195, %197 in 1 : vector<8x64xf32>, vector<8x1xf32>, vector<8x1xf32>, vector<8x62xf32> -> vector<8x128xf32>
    %c0_54 = arith.constant 0 : index
    %c0_55 = arith.constant 0 : index
    %199 = vector.load %arg2[%c0_54, %c0_55] : memref<8x128xf32, #tpu.memory_space<vmem>>, vector<8x128xf32>
    tpu.vector_store %arg2[%c0_54, %c0_55], %198 {strides = array<i32>} : memref<8x128xf32, #tpu.memory_space<vmem>>, vector<8x128xf32>,
    return
  }
}

</mosaic_0001>

<bundles_post_ra>
// kernel: maa_forward.1
= control target key start
LH: loop header
LB: loop body
LE: loop exit
PB: predicated region body
PF: predicated region fallthrough
CT: control target
= control target key end

     0   :  { %7 = vsyncpa [#allocation3], 0  ;;  %s791_s9 = smov [#allocation2]   ;;  %s900_s0 = inlined_call_operand.vmem [shape: f32[8,128], index: 0, kind: input, shape index: {}, may-alias: {0,2}]   ;;  %s901_s1 = inlined_call_operand.hbm [shape: f32[248,256], index: 1, kind: input, shape index: {}]   ;;  %s902_s2 = inlined_call_operand.vmem [shape: f32[8,128], index: 2, kind: output, shape index: {}, may-alias: {0,2}]  }
   0x1   :  { %s15_s10 = sshll.u32 %s791_s9, 4  ;;  %s767_s13 = scalar_lea.hbm %s901_s1, 7936  ;;  %s16_s10 = int_to_ptr.vmem [resolvable:$true] %s15_s10 }
   0x2   :  { %p768_p0 = scmp.ne.s32.totalorder %s901_s1, %s767_s13  ;;  %p771_p1 = scmp.lt.u32.totalorder %s767_s13, %s901_s1 }
   0x4   :  { %p773_p2 = pnand %p771_p1, %p768_p0 }
   0x6   :  { %776 = shalt.err (!%p773_p2)
}
   0x7   :  { %s777_s18 = scalar_lea.vmem %s16_s10, 7936  ;;  %p782_p4 = scmp.lt.s32.totalorder %s16_s10, %s16_s10 }
   0x8   :  { %p778_p3 = scmp.ne.s32.totalorder %s16_s10, %s777_s18  ;;  %p783_p5 = scmp.lt.s32.totalorder %s777_s18, %s777_s18 }
   0xa   :  { %p784_p6 = por %p783_p5, %p782_p4 }
   0xc   :  { %p785_p7 = pnand %p784_p6, %p778_p3 }
   0xe   :  { %788 = shalt.err (!%p785_p7)
}
   0xf   :  { %s792_s19 = smov 256   ;;  %s793_s20 = smov 16  }
  0x10   :  { %21 = dma.hbm_to_vmem [thread:$0]  %s901_s1, 7936, %s16_s10, [#allocation3], %s792_s19, %s792_s19, %s793_s20  }
  0x11   :  { %789 = dma.done.wait [#allocation3], 7936  }
  0x12   :  { %790 = vsyncadd [#allocation3], 4294959360  ;;  %v794_v0 = vmov 24   ;;  %v795_v1 = vmov 26   ;;  %v832_v2 = vld [vmem:[%s900_s0] sm:$0xff]  ;;  %v796_v8 = vmov 25   ;;  %v33_v9 = vlaneseq }
  0x13   :  { %744 = vset.pattern.permute.xlu0 %v794_v0  ;;  %746 = vset.pattern.permute.xlu1 %v795_v1  ;;  %v731_v3 = vtrunc.f32 %v832_v2  ;;  %v797_v14 = vmov 0.0   ;;  %vm63_vm4 = vcmask 318464   ;;  %v80_v27 = vld [vmem:[#allocation2 + $0x20] sm:$0xff]  ;;  %v81_v28 = vld [vmem:[#allocation2 + $0x30] sm:$0xff]  ;;  %v798_v30 = vmov 0.0|0.0   ;;  %s801_s0 = smov 64  }
  0x14   :  { %v836_v10 = vand.u32 127, %v33_v9  ;;  %v82_v29 = vld [vmem:[#allocation2 + $0x40] sm:$0xff]  ;;  %669 = vmatprep.subr.bf16.mxu0 %v798_v30  ;;  %v670_v31 = vpack.c.bf16 %v81_v28, %v80_v27  ;;  %v83_v32 = vld [vmem:[#allocation2 + $0x50] sm:$0xff]  ;;  %vm799_vm5 = vmmov 0   ;;  %675 = vmatprep.subr.bf16.mxu1 %v798_v30  ;;  %vm89_vm6 = vcmask 1046528   ;;  %v289_v28 = vld [vmem:[#allocation2 + $0x118] sm:$0xff] }
  0x15   :  { %v732_v4 = vcvt.f32.s32 %v731_v3  ;;  %628 = vmatprep.mubr.msk.f32.mxu0 %vm799_vm5, %v797_v14  ;;  %647 = vmatprep.mubr.msk.f32.mxu1 %vm799_vm5, %v797_v14  ;;  %v673_v33 = vpack.c.bf16 %v83_v32, %v82_v29  ;;  %v84_v34 = vld [vmem:[#allocation2 + $0x60] sm:$0x7f]  ;;  %vm166_vm7 = vcmask 523264   ;;  %v183_v55 = vld [vmem:[#allocation2 + $0x70] sm:$0xff]  ;;  %v291_v29 = vld [vmem:[#allocation2 + $0x128] sm:$0xff]  ;;  %vm538_vm8 = vcmask 39936  }
  0x16   :  { %vm59_vm3 = vcmp.lt.s32.totalorder %v836_v10, 24  ;;  %671 = vmatpush3.bf16.msra.mxu0 %v670_v31  ;;  %v61_v39 = vld [vmem:[#allocation2] ss:$0 sm:$0xff]  ;;  %v62_v41 = vld [vmem:[#allocation2 + $0x1] ss:$0 sm:$0xff]  ;;  %v185_v58 = vld [vmem:[#allocation2 + $0x90] sm:$0xff]  ;;  %v691_v31 = vpack.c.bf16 %v291_v29, %v289_v28 }
  0x17   :  { %v35_v5 = vadd.s32 24, %v732_v4  ;;  %v51_v6 = vadd.s32 34, %v732_v4  ;;  %v43_v7 = vadd.s32 29, %v732_v4  ;;  %672 = vmatprep.subr.bf16.mxu0 %v798_v30  ;;  %v85_v44 = vld [vmem:[#allocation2 + $0x2] ss:$0 sm:$0xff]  ;;  %v187_v61 = vld [vmem:[#allocation2 + $0xb0] sm:$0xff] }
  0x18   :  { %v184_v56 = vld [vmem:[#allocation2 + $0x80] sm:$0xff]  ;;  %v189_v0 = vld [vmem:[#allocation2 + $0xd0] sm:$0xff]  ;;  %v320_v28 = vshrl.u32 %v33_v9, 7  ;;  %vm576_vm12 = vcmask 531456   ;;  %vm578_vm13 = vcmask 539648  }
  0x19   :  { %37 = vperm.xlu0 %744, %v35_v5   ;;  %53 = vperm.xlu1 %746, %v51_v6   ;;  %v676_v57 = vpack.c.bf16 %v184_v56, %v183_v55  ;;  %v186_v59 = vld [vmem:[#allocation2 + $0xa0] sm:$0xff]  ;;  %v288_v32 = vld [vmem:[#allocation2 + $0x110] sm:$0xff] }
  0x1a   :  { %674 = vmatpush3.bf16.msra.mxu0 %v673_v33  ;;  %v679_v60 = vpack.c.bf16 %v186_v59, %v185_v58  ;;  %v188_v62 = vld [vmem:[#allocation2 + $0xc0] sm:$0xff]  ;;  %v300_v55 = vld [vmem:[#allocation2 + $0x170] sm:$0xff]  ;;  %v307_v59 = vld [vmem:[#allocation2 + $0x1a8] sm:$0xff]  ;;  %v325_v29 = vsub.s32 1, %v320_v28 }
  0x1b   :  { %626 = vmatprep.subr.mxu0 %v797_v14  ;;  %677 = vmatpush3.bf16.msra.mxu1 %v676_v57  ;;  %v682_v63 = vpack.c.bf16 %v188_v62, %v187_v61  ;;  %v286_v27 = vld [vmem:[#allocation2 + $0x100] sm:$0xff]  ;;  %v305_v57 = vld [vmem:[#allocation2 + $0x198] sm:$0xff] }
  0x1c   :  { %678 = vmatprep.subr.bf16.mxu1 %v798_v30  ;;  %v290_v33 = vld [vmem:[#allocation2 + $0x120] sm:$0xff]  ;;  %v707_v62 = vpack.c.bf16 %v307_v59, %v305_v57  ;;  %v454_v59 = vld [vmem:[#allocation2 + $0x78] sm:$0xff] }
  0x1d   :  { %745 = vset.pattern.permute.xlu0 %v796_v8  ;;  %v164_v8 = vld [vmem:[#allocation2 + $0x3] ss:$0 sm:$0xff] }
  0x1e   :  { %45 = vperm.xlu0 %745, %v43_v7   ;;  %627 = vmatpush3.msk.msra.mxu0 %vm89_vm6, %v84_v34  ;;  %v293_v34 = vld [vmem:[#allocation2 + $0x138] sm:$0xff]  ;;  %v302_v56 = vld [vmem:[#allocation2 + $0x180] sm:$0xff] }
  0x1f   :  { %680 = vmatpush3.bf16.msra.mxu1 %v679_v60  ;;  %v705_v58 = vpack.c.bf16 %v302_v56, %v300_v55  ;;  %v304_v60 = vld [vmem:[#allocation2 + $0x190] sm:$0xff]  ;;  %v306_v61 = vld [vmem:[#allocation2 + $0x1a0] sm:$0xff] }
  0x20   :  { %681 = vmatprep.subr.bf16.mxu1 %v798_v30 }
  0x22   :  { %748 = vset.pattern.permute.xlu0 %v795_v1  ;;  %v190_v1 = vld [vmem:[#allocation2 + $0xe0] sm:$0xff] }
  0x23   :  { %683 = vmatpush3.bf16.msra.mxu1 %v682_v63  ;;  %v685_v3 = vpack.c.bf16 %v190_v1, %v189_v0  ;;  %v309_v63 = vld [vmem:[#allocation2 + $0x1b8] sm:$0xff]  ;;  %v311_v0 = vld [vmem:[#allocation2 + $0x1c8] sm:$0xff]  ;;  %v709_v1 = vpack.c.bf16 %v306_v61, %v304_v60 }
  0x24   :  { %684 = vmatprep.subr.bf16.mxu1 %v798_v30  ;;  %v455_v60 = vld [vmem:[#allocation2 + $0x88] sm:$0xff]  ;;  %v456_v61 = vld [vmem:[#allocation2 + $0x98] sm:$0xff] }
  0x27   :  { %686 = vmatpush3.bf16.msra.mxu1 %v685_v3  ;;  %v711_v3 = vpack.c.bf16 %v311_v0, %v309_v63  ;;  %v457_v63 = vld [vmem:[#allocation2 + $0xa8] sm:$0xff] }
  0x28   :  { %719 = vmatprep.subr.bf16.mxu1 %v798_v30  ;;  %v723_v0 = vpack.c.bf16 %v457_v63, %v456_v61 }
  0x98   :  { %v38_v11 = vpop.permute.xlu0 %37  ;;  %v54_v12 = vpop.permute.xlu1 %53 }
  0x99   :  { %vm39_vm0 = vcmp.eq.s32.totalorder %v836_v10, %v38_v11  ;;  %vm55_vm1 = vcmp.eq.s32.totalorder %v836_v10, %v54_v12  ;;  %v165_v12 = vld [vmem:[#allocation2 + $0x4] ss:$0 sm:$0xff] }
  0x9a   :  { %v586_v15 = vsel %vm39_vm0, 1.0, %v797_v14  ;;  %v588_v17 = vsel %vm55_vm1, 1.0, %v797_v14 }
  0x9d   :  { %v46_v13 = vpop.permute.xlu0 %45 }
  0x9e   :  { %vm47_vm2 = vcmp.eq.s32.totalorder %v836_v10, %v46_v13 }
  0x9f   :  { %v587_v16 = vsel %vm47_vm2, 1.0, %v797_v14 }
  0xa0   :  { %v50_v18 = vadd.f32 %v587_v16, %v586_v15  ;;  %v191_v16 = vld [vmem:[#allocation2 + $0x5] ss:$0 sm:$0xff] }
  0xa2   :  { %v58_v19 = vadd.f32 %v588_v17, %v50_v18 }
  0xa4   :  { %v60_v20 = vsel %vm59_vm3, %v832_v2, %v58_v19 }
  0xa5   :  { %v64_v21 = vsel %vm63_vm4, %v60_v20, 0.0 }
  0xa6   :  { %65 = vadd.xlane.f32.xlu1 %v64_v21 }
 0x133   :  { %v66_v22 = vpop.xlane.xlu1 %65 }
 0x134   :  { %v68_v23 = vmul.f32 0.025641026, %v66_v22  ;;  %v285_v22 = vld [vmem:[#allocation2 + $0xf8] sm:$0xff] }
 0x136   :  { %v69_v24 = vsub.f32 %v60_v20, %v68_v23  ;;  %v287_v23 = vld [vmem:[#allocation2 + $0x108] sm:$0xff] }
 0x138   :  { %v70_v25 = vmul.f32 %v69_v24, %v69_v24 }
 0x13a   :  { %v71_v26 = vsel %vm63_vm4, %v70_v25, 0.0  ;;  %v800_v25 = vmov 27  }
 0x13b   :  { %72 = vadd.xlane.f32.xlu0 %v71_v26  ;;  %747 = vset.pattern.permute.xlu1 %v800_v25  ;;  %v687_v26 = vpack.c.bf16 %v287_v23, %v285_v22  ;;  %v267_v23 = vld [vmem:[#allocation2 + $0x7] ss:$0 sm:$0xff] }
 0x13d   :  { %688 = vmatprep.subr.bf16.mxu0 %v687_v26 }
 0x1c8   :  { %v73_v35 = vpop.xlane.xlu0 %72 }
 0x1c9   :  { %v74_v36 = vmul.f32 0.025641026, %v73_v35  ;;  %v295_v35 = vld [vmem:[#allocation2 + $0x148] sm:$0xff] }
 0x1cb   :  { %v75_v37 = vadd.f32 1e-05, %v74_v36  ;;  %v693_v36 = vpack.c.bf16 %v290_v33, %v288_v32 }
 0x1cd   :  { %749 = vrsqrt.f32 %v75_v37  ;;  %v695_v37 = vpack.c.bf16 %v295_v35, %v293_v34  ;;  %v321_v35 = vsub.s32 0, %v320_v28 }
 0x1d7   :  { %v750_v38 = vpop.eup %749 }
 0x1d8   :  { %v77_v40 = vmul.f32 %v750_v38, %v69_v24  ;;  %v284_v24 = vld [vmem:[#allocation2 + $0xf0] sm:$0xff] }
 0x1d9   :  { %v292_v38 = vld [vmem:[#allocation2 + $0x130] sm:$0xff] }
 0x1da   :  { %v78_v42 = vmul.f32 %v77_v40, %v61_v39  ;;  %v294_v39 = vld [vmem:[#allocation2 + $0x140] sm:$0xff] }
 0x1db   :  { %v697_v40 = vpack.c.bf16 %v294_v39, %v292_v38 }
 0x1dc   :  { %v79_v43 = vadd.f32 %v78_v42, %v62_v41 }
 0x1de   :  { %629 = vmatmul.mubr.msk.f32.vlgmr.msra.gmra.mrb[0].mxu0 %vm63_vm4, %v79_v43 }
 0x1df   :  { %393 = vmatprep.mubr.f32.mxu0 %v797_v14 }
 0x2b1   :  { %v159_v45 = vpop.f32.mrb[0].mxu0 }
 0x2b2   :  { %v160_v46 = vadd.f32 %v159_v45, %v85_v44  ;;  %v630_v47 = vpop.f32.mrb[1].mxu0 }
 0x2b3   :  { %v299_v47 = vld [vmem:[#allocation2 + $0x168] sm:$0xff] }
 0x2b4   :  { %v163_v48 = vmax.f32 %v160_v46, 0.0  ;;  %v297_v46 = vld [vmem:[#allocation2 + $0x158] sm:$0xff] }
 0x2b6   :  { %v167_v49 = vsel %vm166_vm7, %v163_v48, 0.0 }
 0x2b7   :  { %168 = vadd.xlane.f32.xlu1 %v167_v49  ;;  %v296_v49 = vld [vmem:[#allocation2 + $0x150] sm:$0xff] }
 0x344   :  { %v169_v50 = vpop.xlane.xlu1 %168 }
 0x345   :  { %v171_v51 = vmul.f32 0.015625, %v169_v50  ;;  %v298_v50 = vld [vmem:[#allocation2 + $0x160] sm:$0xff] }
 0x347   :  { %v172_v52 = vsub.f32 %v163_v48, %v171_v51  ;;  %v699_v48 = vpack.c.bf16 %v299_v47, %v297_v46  ;;  %v701_v51 = vpack.c.bf16 %v298_v50, %v296_v49 }
 0x349   :  { %v173_v53 = vmul.f32 %v172_v52, %v172_v52 }
 0x34b   :  { %v174_v54 = vsel %vm166_vm7, %v173_v53, 0.0  ;;  %v303_v53 = vld [vmem:[#allocation2 + $0x188] sm:$0xff] }
 0x34c   :  { %175 = vadd.xlane.f32.xlu0 %v174_v54 }
 0x3d9   :  { %v176_v4 = vpop.xlane.xlu0 %175 }
 0x3da   :  { %v177_v5 = vmul.f32 0.015625, %v176_v4  ;;  %v308_v4 = vld [vmem:[#allocation2 + $0x1b0] sm:$0xff] }
 0x3dc   :  { %v178_v6 = vadd.f32 1e-05, %v177_v5  ;;  %v310_v5 = vld [vmem:[#allocation2 + $0x1c0] sm:$0xff] }
 0x3de   :  { %751 = vrsqrt.f32 %v178_v6  ;;  %v313_v6 = vld [vmem:[#allocation2 + $0x1d8] sm:$0xff] }
 0x3e8   :  { %v752_v7 = vpop.eup %751 }
 0x3e9   :  { %v180_v11 = vmul.f32 %v752_v7, %v172_v52  ;;  %v301_v52 = vld [vmem:[#allocation2 + $0x178] sm:$0xff]  ;;  %v315_v7 = vld [vmem:[#allocation2 + $0x1e8] sm:$0xff] }
 0x3ea   :  { %v703_v54 = vpack.c.bf16 %v303_v53, %v301_v52 }
 0x3eb   :  { %v181_v13 = vmul.f32 %v180_v11, %v164_v8  ;;  %v713_v8 = vpack.c.bf16 %v310_v5, %v308_v4  ;;  %v715_v11 = vpack.c.bf16 %v315_v7, %v313_v6  ;;  %v460_v5 = vld [vmem:[#allocation2 + $0xd8] sm:$0xff]  ;;  %v461_v6 = vld [vmem:[#allocation2 + $0xe8] sm:$0xff] }
 0x3ec   :  { %v729_v7 = vpack.c.bf16 %v461_v6, %v460_v5 }
 0x3ed   :  { %v182_v15 = vadd.f32 %v181_v13, %v165_v12  ;;  %v312_v12 = vld [vmem:[#allocation2 + $0x1d0] sm:$0xff]  ;;  %v314_v13 = vld [vmem:[#allocation2 + $0x1e0] sm:$0xff] }
 0x3ef   :  { %648 = vmatmul.mubr.msk.f32.vlgmr.msra.gmra.mrb[0].mxu1 %vm166_vm7, %v182_v15  ;;  %v717_v15 = vpack.c.bf16 %v314_v13, %v312_v12 }
 0x3f0   :  { %666 = vmatprep.mubr.msk.f32.mxu1 %vm799_vm5, %v797_v14  ;;  %v689_v14 = vpack.c.bf16 %v286_v27, %v284_v24 }
 0x3f2   :  { %690 = vmatpush1.bf16.msra.mxu0 %v689_v14  ;;  %v317_v14 = vld [vmem:[#allocation2 + $0x13] ss:$8 sm:$0x3] }
 0x3f3   :  { %692 = vmatprep.subr.bf16.mxu0 %v691_v31  ;;  %v326_v31 = vrot.slane %v317_v14, %v325_v29 }
 0x3f6   :  { %694 = vmatpush1.bf16.msra.mxu0 %v693_v36  ;;  %v322_v36 = vrot.slane %v317_v14, %v321_v35 }
 0x3f7   :  { %696 = vmatprep.subr.bf16.mxu0 %v695_v37 }
 0x3fa   :  { %698 = vmatpush1.bf16.msra.mxu0 %v697_v40 }
 0x3fb   :  { %700 = vmatprep.subr.bf16.mxu0 %v699_v48 }
 0x3fe   :  { %702 = vmatpush1.bf16.msra.mxu0 %v701_v51  ;;  %v421_v51 = vld [vmem:[#allocation2 + $0x10] ss:$0 sm:$0xff] }
 0x3ff   :  { %704 = vmatprep.subr.bf16.mxu0 %v703_v54 }
 0x402   :  { %706 = vmatpush1.bf16.msra.mxu0 %v705_v58  ;;  %v422_v58 = vld [vmem:[#allocation2 + $0x11] ss:$0 sm:$0xff] }
 0x403   :  { %708 = vmatprep.subr.bf16.mxu0 %v707_v62  ;;  %v720_v62 = vpack.c.bf16 %v455_v60, %v454_v59 }
 0x405   :  { %721 = vmatpush3.bf16.msra.mxu1 %v720_v62 }
 0x406   :  { %710 = vmatpush1.bf16.msra.mxu0 %v709_v1  ;;  %722 = vmatprep.subr.bf16.mxu1 %v798_v30  ;;  %v458_v1 = vld [vmem:[#allocation2 + $0xb8] sm:$0xff] }
 0x407   :  { %712 = vmatprep.subr.bf16.mxu0 %v711_v3  ;;  %v459_v3 = vld [vmem:[#allocation2 + $0xc8] sm:$0xff] }
 0x408   :  { %v726_v4 = vpack.c.bf16 %v459_v3, %v458_v1 }
 0x409   :  { %724 = vmatpush3.bf16.msra.mxu1 %v723_v0 }
 0x40a   :  { %714 = vmatpush1.bf16.msra.mxu0 %v713_v8  ;;  %725 = vmatprep.subr.bf16.mxu1 %v798_v30 }
 0x40b   :  { %716 = vmatprep.subr.bf16.mxu0 %v715_v11 }
 0x40d   :  { %727 = vmatpush3.bf16.msra.mxu1 %v726_v4 }
 0x40e   :  { %718 = vmatpush1.bf16.msra.mxu0 %v717_v15  ;;  %728 = vmatprep.subr.bf16.mxu1 %v798_v30 }
 0x411   :  { %730 = vmatpush3.bf16.msra.mxu1 %v729_v7 }
 0x4c2   :  { %v261_v17 = vpop.f32.mrb[0].mxu1 }
 0x4c3   :  { %v262_v18 = vadd.f32 %v261_v17, %v191_v16  ;;  %v649_v19 = vpop.f32.mrb[1].mxu1 }
 0x4c5   :  { %v265_v20 = vmax.f32 %v262_v18, 0.0 }
 0x4c7   :  { %v268_v21 = vsel %vm166_vm7, %v265_v20, 0.0 }
 0x4c8   :  { %269 = vadd.xlane.f32.xlu1 %v268_v21  ;;  %v266_v21 = vld [vmem:[#allocation2 + $0x6] ss:$0 sm:$0xff] }
 0x4d9   :  { %29 = vperm.xlu1 %747, %v832_v2  }
 0x555   :  { %v270_v41 = vpop.xlane.xlu1 %269 }
 0x556   :  { %v271_v42 = vmul.f32 0.015625, %v270_v41 }
 0x558   :  { %v272_v43 = vsub.f32 %v265_v20, %v271_v42 }
 0x559   :  { %v30_v20 = vpop.permute.xlu1 %29 }
 0x55a   :  { %v273_v44 = vmul.f32 %v272_v43, %v272_v43  ;;  %v32_v24 = vmul.f32 %v30_v20, %v832_v2 }
 0x55c   :  { %v274_v45 = vsel %vm166_vm7, %v273_v44, 0.0 }
 0x55d   :  { %275 = vadd.xlane.f32.xlu0 %v274_v45 }
 0x5ea   :  { %v276_v16 = vpop.xlane.xlu0 %275 }
 0x5eb   :  { %v277_v17 = vmul.f32 0.015625, %v276_v16 }
 0x5ed   :  { %v278_v18 = vadd.f32 1e-05, %v277_v17 }
 0x5ef   :  { %753 = vrsqrt.f32 %v278_v18 }
 0x5f9   :  { %v754_v19 = vpop.eup %753 }
 0x5fa   :  { %v280_v22 = vmul.f32 %v754_v19, %v272_v43 }
 0x5fc   :  { %v281_v25 = vmul.f32 %v280_v22, %v266_v21  ;;  %v462_v21 = vld [vmem:[#allocation2 + $0x12] ss:$0 sm:$0xff] }
 0x5fe   :  { %v282_v26 = vadd.f32 %v281_v25, %v267_v23 }
 0x600   :  { %v283_v27 = vsel %vm166_vm7, %v282_v26, %v32_v24 }
 0x601   :  { %394 = vmatmul.mubr.f32.vlgmr.msra.gmra.mrb[2].mxu0 %v283_v27 }
 0x6d4   :  { %v395_v32 = vpop.f32.mrb[2].mxu0 }
 0x6d5   :  { %v397_v33 = vpop.f32.mrb[3].mxu0  ;;  %v396_v37 = vadd.f32 %v395_v32, %v322_v36 }
 0x6d6   :  { %v398_v34 = vadd.f32 %v397_v33, %v326_v31 }
 0x6d7   :  { %v592_v2 = vmul.f32 -1.442695, %v396_v37 }
 0x6d8   :  { %407 = vrot.lane.b32.xlu0 %v398_v34, %s801_s0 }
 0x6d9   :  { %755 = vpow2.f32 %v592_v2 }
 0x6e3   :  { %v756_v38 = vpop.eup %755 }
 0x6e4   :  { %v403_v39 = vadd.f32 1.0, %v756_v38 }
 0x6e6   :  { %757 = vrcp.f32 %v403_v39 }
 0x6f0   :  { %v758_v40 = vpop.eup %757 }
 0x6f1   :  { %v413_v44 = vsub.f32 1.0, %v758_v40  ;;  %v419_v46 = vmul.f32 %v758_v40, %v32_v24 }
 0x74a   :  { %v408_v41 = vpop.permute.xlu0 %407 }
 0x74b   :  { %v410_v9 = vmul.f32 %v758_v40, %v408_v41 }
 0x74d   :  { %v411_v42 = vadd.f32 %v410_v9, %v398_v34 }
 0x74f   :  { %759 = vtanh.f32 %v411_v42 }
 0x759   :  { %v760_v43 = vpop.eup %759 }
 0x75a   :  { %415 = vrot.lane.b32.xlu1 %v760_v43, %s801_s0 }
 0x7cc   :  { %v416_v45 = vpop.permute.xlu1 %415 }
 0x7cd   :  { %v418_v47 = vmul.f32 %v416_v45, %v413_v44 }
 0x7cf   :  { %v420_v48 = vadd.f32 %v419_v46, %v418_v47 }
 0x7d1   :  { %424 = vrot.lane.b32.xlu1 %v420_v48, %s801_s0 }
 0x843   :  { %v876_v49 = vpop.permute.xlu1 %424 }
 0x844   :  { %v427_v50 = vsel %vm166_vm7, %v876_v49, 0.0 }
 0x845   :  { %428 = vadd.xlane.f32.xlu0 %v427_v50 }
 0x85b   :  { %445 = vrot.lane.b32.xlu0 %v421_v51, %s801_s0 }
 0x8d2   :  { %v429_v52 = vpop.xlane.xlu0 %428 }
 0x8d3   :  { %v430_v53 = vmul.f32 0.015625, %v429_v52 }
 0x8d5   :  { %v431_v54 = vsub.f32 %v420_v48, %v430_v53 }
 0x8d6   :  { %v446_v15 = vpop.permute.xlu0 %445 }
 0x8d7   :  { %v432_v55 = vmul.f32 %v431_v54, %v431_v54 }
 0x8d9   :  { %434 = vrot.lane.b32.xlu1 %v432_v55, %s801_s0 }
 0x94b   :  { %v435_v56 = vpop.permute.xlu1 %434 }
 0x94c   :  { %v437_v57 = vsel %vm166_vm7, %v435_v56, 0.0 }
 0x94d   :  { %438 = vadd.xlane.f32.xlu1 %v437_v57 }
 0x95e   :  { %450 = vrot.lane.b32.xlu1 %v422_v58, %s801_s0 }
 0x9da   :  { %v439_v8 = vpop.xlane.xlu1 %438 }
 0x9db   :  { %v440_v11 = vmul.f32 0.015625, %v439_v8 }
 0x9dd   :  { %v441_v12 = vadd.f32 1e-05, %v440_v11 }
 0x9de   :  { %v451_v17 = vpop.permute.xlu1 %450 }
 0x9df   :  { %761 = vrsqrt.f32 %v441_v12 }
 0x9e9   :  { %v762_v13 = vpop.eup %761 }
 0x9ea   :  { %v443_v16 = vmul.f32 %v762_v13, %v431_v54 }
 0x9ec   :  { %v448_v18 = vmul.f32 %v446_v15, %v443_v16 }
 0x9ee   :  { %v453_v19 = vadd.f32 %v451_v17, %v448_v18 }
 0x9f0   :  { %464 = vrot.lane.b32.xlu0 %v453_v19, %s801_s0 }
 0xa62   :  { %v465_v20 = vpop.permute.xlu0 %464 }
 0xa63   :  { %667 = vmatmul.mubr.msk.f32.vlgmr.msra.gmra.mrb[2].mxu1 %vm166_vm7, %v465_v20 }
 0xb36   :  { %v534_v22 = vpop.f32.mrb[2].mxu1 }
 0xb37   :  { %v535_v30 = vadd.f32 %v534_v22, %v462_v21  ;;  %v668_v23 = vpop.f32.mrb[3].mxu1 }
 0xb39   :  { %v539_v24 = vsel %vm538_vm8, %v535_v30, -inf }
 0xb3a   :  { %540 = vmax.xlane.f32.xlu0 %v539_v24 }
 0xbc7   :  { %v541_v25 = vpop.xlane.xlu0 %540 }
 0xbc8   :  { %vm542_vm9 = vcmp.eq.f32.partialorder %v535_v30, %v541_v25  ;;  %v559_v26 = vsub.f32 %v535_v30, %v541_v25 }
 0xbc9   :  { %v543_v27 = vsel %vm542_vm9, %v836_v10, 5 }
 0xbca   :  { %v560_v28 = vmul.f32 1.442695, %v559_v26  ;;  %v544_v29 = vsel %vm538_vm8, %v543_v27, 2147483647 }
 0xbcb   :  { %v546_v14 = vshra.s32 %v544_v29, 16  ;;  %v545_v34 = vand.u32 65535, %v544_v29 }
 0xbcc   :  { %763 = vpow2.f32 %v560_v28 }
 0xbcd   :  { %v548_v31 = vcvt.s32.f32 %v546_v14  ;;  %v547_v36 = vcvt.s32.f32 %v545_v34 }
 0xbcf   :  { %549 = vmin.xlane.f32.xlu1 %v548_v31 }
 0xbd6   :  { %v764_v32 = vpop.eup %763 }
 0xbd7   :  { %v562_v33 = vsel %vm538_vm8, %v764_v32, 0.0 }
 0xbd8   :  { %563 = vadd.xlane.f32.xlu0 %v562_v33 }
 0xc5c   :  { %v550_v35 = vpop.xlane.xlu1 %549 }
 0xc5d   :  { %vm551_vm10 = vcmp.eq.f32.partialorder %v548_v31, %v550_v35  ;;  %v556_v40 = vcvt.f32.s32 %v550_v35 }
 0xc5e   :  { %v552_v37 = vsel %vm551_vm10, %v547_v36, inf }
 0xc5f   :  { %553 = vmin.xlane.f32.xlu0 %v552_v37  ;;  %v557_v42 = vshll.u32 %v556_v40, 16 }
 0xc65   :  { %v564_v2 = vpop.xlane.xlu0 %563 }
 0xc66   :  { %765 = vlog2.f32 %v564_v2 }
 0xc70   :  { %v766_v38 = vpop.eup %765 }
 0xc71   :  { %v566_v39 = vmul.f32 0.6931472, %v766_v38 }
 0xc73   :  { %v567_v41 = vadd.f32 %v566_v39, %v541_v25 }
 0xc75   :  { %v569_v45 = vsub.f32 %v535_v30, %v567_v41 }
 0xcec   :  { %v554_v9 = vpop.xlane.xlu0 %553 }
 0xced   :  { %v555_v43 = vcvt.f32.s32 %v554_v9 }
 0xcef   :  { %v558_v44 = vadd.s32 %v557_v42, %v555_v43 }
 0xcf1   :  { %vm568_vm11 = vcmp.eq.s32.totalorder %v836_v10, %v558_v44  ;;  %v574_v48 = vcvt.s32.f32 %v558_v44 }
 0xcf2   :  { %v570_v46 = vsel %vm568_vm11, %v569_v45, 0.0 }
 0xcf3   :  { %v571_v47 = vsel %vm538_vm8, %v570_v46, 0.0  ;;  %v575_v50 = vsel %vm166_vm7, %v876_v49, %v574_v48 }
 0xcf4   :  { %572 = vadd.xlane.f32.xlu1 %v571_v47 }
 0xd81   :  { %v573_v51 = vpop.xlane.xlu1 %572 }
 0xd82   :  { %v577_v52 = vsel %vm576_vm12, %v575_v50, %v573_v51 }
 0xd83   :  { %v579_v53 = vsel %vm578_vm13, %v577_v52, 0.0 }
 0xd84   :  { %580 = vst [vmem:[%s902_s2] sm:$0xff] %v579_v53 }
 0xd85   :  { %585 = vsyncpa [#allocation3], 1 }

</bundles_post_ra>
